<compile_context>
chip_gen: v6e
topology: v6e:2x2x1
jax: 0.10.0
libtpu: 0.0.40
codegen_flags: <defaults>
</compile_context>

<pallas_src>
import jax
import jax.numpy as jnp
from jax.experimental import pallas as pl
from jax.experimental.pallas import tpu as pltpu


# ----------------------------------------------------------------------------
# FAST path: table resident in VMEM, gather = plain VMEM row copies.
# ----------------------------------------------------------------------------
def _embed_vmem_kernel(ids_ref, w_ref, o_ref):
    """ids_ref: (n_pad,) int32 in SMEM (scalar prefetch)
    w_ref  : (V, D) embedding table, resident in VMEM (constant index_map)
    o_ref  : (tile, D) output tile in VMEM (auto write-back to HBM)
    """
    tile = o_ref.shape[0]
    base = pl.program_id(0) * tile

    @pl.loop(0, tile)
    def _gather(t):
        row = ids_ref[base + t]
        o_ref[pl.ds(t, 1), :] = w_ref[pl.ds(row, 1), :]


# ----------------------------------------------------------------------------
# SLOW path: table in HBM, per-row DMA gather with bounded-lag issue/wait.
# ----------------------------------------------------------------------------
def _embed_hbm_kernel(ids_ref, w_hbm, o_ref, sem):
    """ids_ref: (n_pad,) int32 in SMEM (scalar prefetch)
    w_hbm  : (V, D) embedding table, raw HBM ref (no auto-DMA)
    o_ref  : (tile, D) output tile in VMEM
    sem    : (8,) DMA semaphore scratch (one per in-flight copy slot)
    """
    tile = o_ref.shape[0]          # static Python int, multiple of 8, >= 8
    base = pl.program_id(0) * tile
    lag = 8                        # power of two; bounds outstanding DMAs

    def row_copy(t):
        # Rebuilt identically for start and wait: same src row, same dst row,
        # same per-slot semaphore (no wait-by-size-only fragility).
        row = ids_ref[base + t]
        return pltpu.make_async_copy(
            w_hbm.at[pl.ds(row, 1), :],      # one (1, D) table row in HBM
            o_ref.at[pl.ds(t, 1), :],        # -> row t of the VMEM output tile
            sem.at[t & (lag - 1)],
        )

    @pl.loop(0, tile)
    def _issue(t):
        row_copy(t).start()

        @pl.when(t >= lag)
        def _wait_lagged():
            row_copy(t - lag).wait()

    # Tail drain: the last `lag` copies were issued but not yet waited on.
    @pl.loop(tile - lag, tile)
    def _drain(t):
        row_copy(t).wait()


def token_embedding(x, table, *, force_hbm_gather=False):
    """x: (B, S) integer token ids; table: (V, D) -> (B, S, D) of table.dtype."""
    b, s = x.shape
    v, d = table.shape
    n = b * s
    itemsize = jnp.dtype(table.dtype).itemsize

    # --- token tile: scale with D (~256 KiB of payload per output buffer) ---
    tile = max(256, min(2048, (256 * 1024) // max(1, d * itemsize)))
    tile = (tile // 8) * 8
    tile = min(tile, 8 * pl.cdiv(n, 8))
    if pl.cdiv(n, tile) < 2 and tile >= 16:
        # Prefer >= 2 grid steps so both v7x TensorCores get work
        # (harmless ~0.35us extra step on single-TC v5e/v6e).
        tile = 8 * pl.cdiv(pl.cdiv(n, 2), 8)
    tile = max(8, tile)
    n_pad = tile * pl.cdiv(n, tile)

    # Clamp ids (guards OOB reads; torch.nn.Embedding raises -- here invalid
    # ids silently map to row 0 / V-1).  Pad tail tokens gather row 0 and are
    # sliced off after the call.
    ids = jnp.clip(x.reshape(n).astype(jnp.int32), 0, v - 1)
    if n_pad != n:
        ids = jnp.concatenate([ids, jnp.zeros((n_pad - n,), jnp.int32)])
    # NOTE: full id vector is scalar-prefetched into SMEM; 1-D SMEM pads to
    # next_pow2(4N) bytes, so this is fine up to ~2^17 tokens per call.

    grid = (n_pad // tile,)
    out_shape = jax.ShapeDtypeStruct((n_pad, d), table.dtype)
    out_spec = pl.BlockSpec((tile, d), lambda i, ids: (i, 0))
    out_bytes = n_pad * d * itemsize
    table_bytes = v * d * itemsize
    out_block_bytes = tile * d * itemsize

    # Conservative budget that holds on v5e/v6e (128 MiB physical) and v7x
    # (64 MiB/TC physical); set explicitly since v5e's default scoped limit
    # is only 16 MiB.
    vmem_budget = 32 * 1024 * 1024
    # 2x table (pipeline may double-buffer it) + 2x output block + margin.
    fits_vmem = (2 * table_bytes + 2 * out_block_bytes + (1 << 20)) <= vmem_budget

    if fits_vmem and not force_hbm_gather:
        call = pl.pallas_call(
            _embed_vmem_kernel,
            out_shape=out_shape,
            grid_spec=pltpu.PrefetchScalarGridSpec(
                num_scalar_prefetch=1,                              # ids -> SMEM
                grid=grid,
                in_specs=[pl.BlockSpec((v, d), lambda i, ids: (0, 0))],  # resident
                out_specs=out_spec,
            ),
            compiler_params=pltpu.CompilerParams(
                dimension_semantics=("parallel",),
                vmem_limit_bytes=vmem_budget,
            ),
            cost_estimate=pl.CostEstimate(
                flops=0, transcendentals=0,
                bytes_accessed=table_bytes + 4 * n_pad + out_bytes),
        )
    else:
        call = pl.pallas_call(
            _embed_hbm_kernel,
            out_shape=out_shape,
            grid_spec=pltpu.PrefetchScalarGridSpec(
                num_scalar_prefetch=1,                              # ids -> SMEM
                grid=grid,
                in_specs=[pl.BlockSpec(memory_space=pl.ANY)],       # table in HBM
                out_specs=out_spec,
                scratch_shapes=[pltpu.SemaphoreType.DMA((8,))],
            ),
            compiler_params=pltpu.CompilerParams(
                dimension_semantics=("parallel",),
                vmem_limit_bytes=vmem_budget,
            ),
            cost_estimate=pl.CostEstimate(
                flops=0, transcendentals=0,
                bytes_accessed=out_bytes + 4 * n_pad + out_bytes),
        )

    out = call(ids, table)
    return out[:n].reshape(b, s, d)


if __name__ == "__main__":
    # Module hyperparameters (small, consistent with the forward pass).
    d_model = 32
    number_of_tokens = 64
    batch, seq = 2, 8

    key = jax.random.PRNGKey(0)
    k_ids, k_w = jax.random.split(key)

    # Deterministic parameter init (torch.nn.Embedding default: N(0, 1)).
    table = jax.random.normal(k_w, (number_of_tokens, d_model), dtype=jnp.float32)

    # Deterministic integer token ids in [0, number_of_tokens).
    x = jax.random.randint(k_ids, (batch, seq), 0, number_of_tokens, dtype=jnp.int32)

    # Reference semantics of nn.Embedding: plain row gather.
    ref = jnp.take(table, x, axis=0)

    # Fast path (VMEM-resident table) -- what this table size actually uses.
    y_fast = jax.block_until_ready(token_embedding(x, table))
    assert y_fast.shape == (batch, seq, d_model)
    assert jnp.allclose(y_fast, ref), "VMEM fast path mismatch vs reference gather"

    # Also exercise the HBM per-row-DMA path (used when the table is too big
    # for VMEM) to make sure both code paths stay healthy.
    y_hbm = jax.block_until_ready(token_embedding(x, table, force_hbm_gather=True))
    assert jnp.allclose(y_hbm, ref), "HBM gather path mismatch vs reference gather"

    print("KERNEL_OK")
</pallas_src>

<mosaic_0001>
module attributes {stable_mosaic.version = 11 : i64} {
  func.func @_embed_vmem_kernel(%arg0: i32, %arg1: memref<16xi32, #tpu.memory_space<smem>>, %arg2: memref<64x32xf32, #tpu.memory_space<vmem>>, %arg3: memref<8x32xf32, #tpu.memory_space<vmem>>) attributes {dimension_semantics = [#tpu.dimension_semantics<parallel>], iteration_bounds = array<i64: 2>, scalar_prefetch = 1 : i64, scratch_operands = 0 : i64, tpu.core_type = #tpu.core_type<tc>, window_params = [{pipeline_mode = #tpu.pipeline_mode<synchronous>, transform_indices = @transform_0, window_bounds = array<i64: 64, 32>}, {transform_indices = @transform_1, window_bounds = array<i64: 8, 32>}]} {
    %c8_i32 = arith.constant 8 : i32
    %0 = arith.muli %arg0, %c8_i32 : i32
    %c0_i32 = arith.constant 0 : i32
    %c8_i32_0 = arith.constant 8 : i32
    %1 = arith.addi %c0_i32, %c8_i32_0 : i32
    %c1_i32 = arith.constant 1 : i32
    scf.for %arg4 = %c0_i32 to %1 step %c1_i32  : i32 {
      %c1_i32_2 = arith.constant 1 : i32
      %2 = arith.muli %arg4, %c1_i32_2 : i32
      %c0_i32_3 = arith.constant 0 : i32
      %3 = arith.addi %c0_i32_3, %2 : i32
      %4 = arith.addi %0, %3 : i32
      %5 = arith.index_cast %4 : i32 to index
      %6 = memref.load %arg1[%5] : memref<16xi32, #tpu.memory_space<smem>>
      %7 = arith.index_cast %6 : i32 to index
      %c0 = arith.constant 0 : index
      %8 = vector.load %arg2[%7, %c0] : memref<64x32xf32, #tpu.memory_space<vmem>>, vector<1x32xf32>
      %9 = arith.index_cast %3 : i32 to index
      %c0_4 = arith.constant 0 : index
      %10 = vector.load %arg3[%9, %c0_4] : memref<8x32xf32, #tpu.memory_space<vmem>>, vector<1x32xf32>
      tpu.vector_store %arg3[%9, %c0_4], %8 {strides = array<i32>} : memref<8x32xf32, #tpu.memory_space<vmem>>, vector<1x32xf32>,
    }
    %c8_i32_1 = arith.constant 8 : i32
    return
  }
  func.func @transform_0(%arg0: i32, %arg1: memref<16xi32, #tpu.memory_space<smem>>) -> (i32, i32) {
    %c0_i32 = arith.constant 0 : i32
    %c0_i32_0 = arith.constant 0 : i32
    %c0_i32_1 = arith.constant 0 : i32
    return %c0_i32, %c0_i32_0 : i32, i32
  }
  func.func @transform_1(%arg0: i32, %arg1: memref<16xi32, #tpu.memory_space<smem>>) -> (i32, i32) {
    %c0_i32 = arith.constant 0 : i32
    %c0_i32_0 = arith.constant 0 : i32
    return %arg0, %c0_i32 : i32, i32
  }
}

</mosaic_0001>

<bundles_post_ra>
// kernel: tpu_custom_call.1
= control target key start
LH: loop header
LB: loop body
LE: loop exit
PB: predicated region body
PF: predicated region fallthrough
CT: control target
= control target key end

     0   :  { %s431_s0 = inlined_call_operand.vmem [shape: s32[16], index: 0, kind: input, shape index: {}]   ;;  %s432_s1 = inlined_call_operand.vmem [shape: f32[64,32], index: 1, kind: input, shape index: {}]   ;;  %s433_s2 = inlined_call_operand.hbm [shape: f32[16,32], index: 2, kind: output, shape index: {}]  }
   0x1   :  { %s7_s11 = sshll.u32 %s431_s0, 4  ;;  %s8_s11 = int_to_ptr.vmem [resolvable:$true] %s7_s11 }
   0x2   :  { %s241_s12 = scalar_lea.vmem %s8_s11, 16  ;;  %p246_p1 = scmp.lt.s32.totalorder %s8_s11, %s8_s11 }
   0x3   :  { %p242_p0 = scmp.ne.s32.totalorder %s8_s11, %s241_s12  ;;  %p247_p2 = scmp.lt.s32.totalorder %s241_s12, %s241_s12 }
   0x5   :  { %p248_p3 = por %p247_p2, %p246_p1 }
   0x7   :  { %p249_p4 = pnand %p248_p3, %p242_p0 }
   0x9   :  { %252 = shalt.err (!%p249_p4)  }
   0xa   :  { %s325_s13 = smov [#allocation3]  }
   0xb   :  { %10 = dma.vmem_to_smem %s8_s11, 16, %s325_s13, [#allocation2] }
   0xc   :  { %299 = dma.done.wait [#allocation2], 16 }
   0xd   :  { %300 = vsyncadd [#allocation2], 4294967280 }
   0xe   :  { %12 = sfence }
   0xf   :  { %13 = vsyncpa [#allocation5], 0 }
  0x10   :  { %15 = vsyncpa [#allocation5 + $0x1], 0  ;;  %s345_s14 = smov 0   ;;  %s347_s15 = smov 0  }
  0x11   :  { %s349_s0 = smov 0   ;;  %s351_s16 = smov 0  }
  0x12 LB: > { %s366_s17 = sadd.s32 4294967295, %s319_s16   ;;  %s184_s18 = sadd.s32 4294967294, %s319_s16   ;;  %s319_s16 = sphi %s351_s16, %s439_s16   ;;  %s315_s0 = sphi %s349_s0, %s438_s0   ;;  %s311_s15 = sphi %s347_s15, %s437_s15   ;;  %s307_s14 = sphi %s345_s14, %s436_s14  }
  0x13   : > { %s370_s19 = sadd.s32 1, %s319_s16   ;;  %s49_s20 = sadd.s32 1, %s315_s0 }
  0x14   : > { %s46_s21 = ssub.s32 %s319_s16, %s370_s19  ;;  %p59_p5 = scmp.ne.s32.totalorder %s315_s0, %s311_s15 }
  0x15   : > { %p47_p6 = scmp.eq.s32.totalorder %s46_s21, 0  ;;  %p60_p7 = scmp.eq.s32.totalorder %s366_s17, 1 }
  0x16   : > { %p65_p8 = scmp.ne.s32.totalorder %s311_s15, %s307_s14  ;;  %p66_p9 = scmp.eq.s32.totalorder %s184_s18, 1 }
  0x17   : > { %s381_s22 = scalar_select %p47_p6, %s315_s0, %s49_s20  }
  0x18   : > { %p383_p10 = por %p60_p7, %p59_p5  ;;  %p387_p11 = por %p66_p9, %p65_p8 }
  0x19   : > { %p186_p12 = scmp.ge.s32.totalorder %s319_s16, 1  ;;  %p87_p13 = scmp.lt.s32.totalorder %s319_s16, 3 }
  0x1b   : > { %p88_p0 = pnand %p186_p12, %p87_p13 }
  0x1c   : > { %s99_s25 = sand.u32 (!%p88_p0), 1, %s311_s15   ;;  %s188_s26 = sshll.u32 (!%p88_p0), %s366_s17, 3 }
  0x1d   : > { %91 = sbr.rel (%p88_p0) target bundleno = 61 (0x3d), region = 24  ;;  %s187_s27 = sshll.u32 (!%p88_p0), %s99_s25, 3 }
  0x1e   : > { %s101_s28 = scalar_lea.vmem (!%p88_p0), [#allocation4], %s187_s27  ;;  %s321_s29 = smov (!%p88_p0), 0  }
  0x22 LB: >> { %s109_s30 = sadd.s32 %s323_s29, %s188_s26  ;;  %s113_s4 = scalar_lea.vmem %s101_s28, %s323_s29 [#allocation4]  ;;  %vm114_vm0 = vcmask 253952   ;;  %s323_s29 = sphi %s321_s29, %s108_s29  }
  0x23   : >> { %s110_s3 = sld [smem:[#allocation3 + %s109_s30]]  ;;  %s108_s29 = sadd.s32 1, %s323_s29  }
  0x24   : >> { %p105_p1 = scmp.ge.s32.totalorder %s108_s29, 8  }
  0x25   : > { %s190_s8 = sshll.u32 (%p105_p1), %s366_s17, 7  ;;  %s130_s12 = sshll.u32 (%p105_p1), %s101_s28, 4  ;;  %s131_s12 = int_to_ptr.vmem [resolvable:$true] %s130_s12 }
  0x26   : > { %s128_s11 = scalar_lea.hbm (%p105_p1), %s433_s2, %s190_s8  ;;  %s117_s13 = scalar_lea.sflag (%p105_p1), [#allocation5], %s99_s25 }
  0x27   : > { %107 = sbr.rel (!%p105_p1) target bundleno = 34 (0x22), region = 65  ;;  %s253_s18 = scalar_lea.vmem (%p105_p1), %s131_s12, 128 }
  0x28   : > { %p254_p2 = scmp.ne.s32.totalorder (%p105_p1), %s131_s12, %s253_s18  ;;  %s326_s20 = smov (%p105_p1), [#allocation4]  }
  0x29   : >> { %s111_s7 = scalar_lea.vmem %s432_s1, %s110_s3  ;;  %s257_s21 = sshll.u32 (%p105_p1), %s326_s20, 4  ;;  %s258_s21 = int_to_ptr.vmem [resolvable:$false] %s257_s21 }
  0x2a   : >> { %v112_v0 = vld [vmem:[%s111_s7] sm:$0x1]  ;;  %p255_p3 = pnand (%p105_p1), %p254_p2, %p383_p10  ;;  %s259_s27 = scalar_lea.vmem (%p105_p1), %s258_s21, 256 }
  0x2b   : >> { %115 = vst.msk [vmem:[%s113_s4] sm:$0x1] %vm114_vm0, %v112_v0  ;;  %p260_p5 = scmp.lt.s32.totalorder (%p105_p1), %s131_s12, %s258_s21  ;;  %p261_p6 = scmp.lt.s32.totalorder (%p105_p1), %s259_s27, %s253_s18 }
  0x2c   : > { %p256_p4 = pneg %p255_p3 }
  0x2d   : > { %p262_p7 = por %p261_p6, %p260_p5 }
  0x2f   : > { %p263_p8 = pnand %p262_p7, %p256_p4 }
  0x31   : > { %266 = shalt.err (!%p263_p8)
}
  0x32   : > { %s267_s17 = scalar_lea.hbm %s128_s11, 128  ;;  %s271_s28 = scalar_lea.hbm %s433_s2, 256 }
  0x33   : > { %p268_p9 = scmp.ne.s32.totalorder %s128_s11, %s267_s17  ;;  %p272_p0 = scmp.lt.s32.totalorder %s128_s11, %s433_s2 }
  0x34   : > { %p273_p1 = scmp.lt.s32.totalorder %s271_s28, %s267_s17 }
  0x35   : > { %p269_p12 = pnand %p268_p9, %p383_p10 }
  0x36   : > { %p274_p2 = por %p273_p1, %p272_p0 }
  0x37   : > { %p270_p13 = pneg %p269_p12 }
  0x39   : > { %p275_p3 = pnand %p274_p2, %p270_p13 }
  0x3b   : > { %278 = shalt.err (!%p275_p3)
}
  0x3c   : > { %193 = dma.vmem_to_hbm [thread:$0]  (%p383_p10), %s131_s12, 128, %s128_s11, %s117_s13  }
  0x3d PF: > { %p199_p4 = scmp.ge.s32.totalorder %s319_s16, 2  ;;  %s142_s3 = sand.u32 1, %s307_s14  }
  0x3e   : > { %s143_s4 = scalar_lea.sflag [#allocation5], %s142_s3 }
  0x3f   : > { %p196_p5 = pnand %p199_p4, %p387_p11 }
  0x41   : > { %p197_p6 = pneg %p196_p5 }
  0x43   : > { %302 = dma.done.wait (%p197_p6), %s143_s4, 128  }
  0x44   : > { %304 = vsyncadd (%p197_p6), %s143_s4, 4294967168  ;;  %p18_p7 = scmp.ge.s32.totalorder %s370_s19, 4   ;;  %s436_s14 = smov %s311_s15 }
  0x45   : > { %s437_s15 = smov %s315_s0  ;;  %s438_s0 = smov %s381_s22 }
  0x46   : > { %s439_s16 = smov %s370_s19  ;;  %20 = sbr.rel (!%p18_p7) target bundleno = 18 (0x12), region = 76 }
  0x4b   :  { %148 = vsyncpa [#allocation5], 1 }
  0x4c   :  { %150 = vsyncpa [#allocation5 + $0x1], 1 }

</bundles_post_ra>
